<compile_context>
chip_gen: v7x
topology: tpu7x:2x2x1
jax: 0.10.0
libtpu: 0.0.40
codegen_flags: <defaults>
</compile_context>

<pallas_src>
import functools

import jax
import jax.numpy as jnp
from jax.experimental import pallas as pl
from jax.experimental.pallas import tpu as pltpu


def _attn_kernel(l_ref, g_ref, w_ref, c_ref, gout_ref,
                 m_scr, z_scr, acc_scr, *,
                 normalize_attn, hw_total, tile, needs_mask):
    t = pl.program_id(1)
    nt = pl.num_programs(1)

    @pl.when(t == 0)
    def _init():
        m_scr[...] = jnp.full_like(m_scr, -jnp.inf)
        z_scr[...] = jnp.zeros_like(z_scr)
        acc_scr[...] = jnp.zeros_like(acc_scr)

    # Keep tiles in their native dtype (bf16 stays bf16 on v6e/v7x; f32 stays f32).
    l_t = l_ref[0]                                   # (C, T)
    s_t = l_t + g_ref[0]                             # (C, T)

    # 1x1 conv (C -> 1, no bias) == (1,C) x (C,T) MXU matvec, f32 accumulation.
    c_t = jnp.dot(w_ref[...].astype(s_t.dtype), s_t,
                  preferred_element_type=jnp.float32)        # (1, T) f32 logits
    c_ref[0] = c_t.astype(c_ref.dtype)

    if needs_mask:
        lane = jax.lax.broadcasted_iota(jnp.int32, (1, tile), 1)
        valid = (t * tile + lane) < hw_total                  # (1, T) bool
        # Zero garbage lanes of l so the OOB-padded region can't pollute the MXU sum.
        l_t = jnp.where(valid, l_t, jnp.zeros_like(l_t))
    else:
        valid = None

    if normalize_attn:
        logits = c_t if valid is None else jnp.where(valid, c_t, -jnp.inf)
        m_old = m_scr[...]                                               # (1, 1)
        m_new = jnp.maximum(m_old, jnp.max(logits, axis=1, keepdims=True))
        alpha = jnp.exp(m_old - m_new)                                   # (1, 1)
        p = jnp.exp(logits - m_new)                                      # (1, T), 0 on masked lanes
        z_scr[...] = z_scr[...] * alpha + jnp.sum(p, axis=1, keepdims=True)
        # Weighted channel sum on the MXU: (C,T) @ (T,1), f32 accumulation.
        acc_scr[...] = acc_scr[...] * alpha + jnp.dot(
            l_t, p.astype(l_t.dtype).T, preferred_element_type=jnp.float32)
        m_scr[...] = m_new

        @pl.when(t == nt - 1)
        def _final():
            gout_ref[0] = (acc_scr[...] / z_scr[...]).astype(gout_ref.dtype)
    else:
        a_t = jax.nn.sigmoid(c_t)                                        # (1, T)
        if valid is not None:
            a_t = jnp.where(valid, a_t, jnp.zeros_like(a_t))
        acc_scr[...] = acc_scr[...] + jnp.dot(
            l_t, a_t.astype(l_t.dtype).T, preferred_element_type=jnp.float32)

        @pl.when(t == nt - 1)
        def _final():
            gout_ref[0] = (acc_scr[...] * (1.0 / hw_total)).astype(gout_ref.dtype)


def _pick_hw_tile(hw, c, itemsize, budget_bytes):
    """Spatial tile width T (lanes) and whether a masked tail tile is required.

    T is a multiple of 128 (or the full extent when HW <= 128) sized so each input
    block is ~budget_bytes, preferring exact divisors of HW (no masking needed).
    """
    if hw <= 128:
        return hw, False
    max_t = max(128, (budget_bytes // (itemsize * max(c, 1))) // 128 * 128)
    max_t = min(max_t, 32768)
    hw_pad = ((hw + 127) // 128) * 128
    cap = min(max_t, hw_pad)

    # Largest multiple-of-128 exact divisor of HW not exceeding the cap.
    best = 0
    t = 128
    while t <= cap and t <= hw:
        if hw % t == 0:
            best = t
        t += 128
    if best and best * 2 > cap:
        return best, False

    # No reasonably large exact divisor: fixed multiple-of-128 tile + masked tail.
    return cap, (hw % cap) != 0


def linear_attention_block(l, g, w, normalize_attn=True):
    """LinearAttentionBlock forward.

    l, g : (N, C, W, H)  NCHW, like PyTorch
    w    : (1, C, 1, 1)  Conv2d(C, 1, kernel_size=1, bias=False) weight
    returns: (c (N, 1, W, H), g_out (N, C))
    """
    N, C, W, H = l.shape
    HW = W * H
    itemsize = jnp.dtype(l.dtype).itemsize

    # Generation-aware VMEM budgeting (v5e/v6e: 128 MiB physical, v7x: 64 MiB).
    try:
        vmem_cap = int(pltpu.get_tpu_info().vmem_capacity_bytes)
    except Exception:
        vmem_cap = 128 << 20
    vmem_limit = min((vmem_cap * 3) // 4, 96 << 20)
    # 2 inputs x 2 pipeline buffers + in-kernel intermediates ~= 6x block bytes.
    per_input_budget = min(4 << 20, vmem_limit // 12)

    T, needs_mask = _pick_hw_tile(HW, C, itemsize, per_input_budget)
    n_t = pl.cdiv(HW, T)

    # Free reshapes only -- no layout transposes around the kernel.
    l3 = l.reshape(N, C, HW)
    g3 = g.reshape(N, C, HW)
    w2 = w.reshape(1, C)

    kernel = functools.partial(_attn_kernel,
                               normalize_attn=normalize_attn,
                               hw_total=HW,
                               tile=T,
                               needs_mask=needs_mask)

    c_out, g_out = pl.pallas_call(
        kernel,
        out_shape=(jax.ShapeDtypeStruct((N, 1, HW), l.dtype),
                   jax.ShapeDtypeStruct((N, C, 1), l.dtype)),
        grid=(N, n_t),
        in_specs=[
            pl.BlockSpec((1, C, T), lambda b, t: (b, 0, t)),   # l tile
            pl.BlockSpec((1, C, T), lambda b, t: (b, 0, t)),   # g tile
            pl.BlockSpec((1, C), lambda b, t: (0, 0)),         # conv weight (full)
        ],
        out_specs=(
            pl.BlockSpec((1, 1, T), lambda b, t: (b, 0, t)),   # c logits tile (lane-dense)
            pl.BlockSpec((1, C, 1), lambda b, t: (b, 0, 0)),   # g_out (resident over t)
        ),
        scratch_shapes=[
            pltpu.VMEM((1, 1), jnp.float32),   # running max m
            pltpu.VMEM((1, 1), jnp.float32),   # running denom Z
            pltpu.VMEM((C, 1), jnp.float32),   # running weighted sum of l
        ],
        compiler_params=pltpu.CompilerParams(
            dimension_semantics=("parallel", "arbitrary"),
            vmem_limit_bytes=int(vmem_limit)),
    )(l3, g3, w2)

    return c_out.reshape(N, 1, W, H), g_out.reshape(N, C)


def _reference(l, g, w, normalize_attn=True):
    # Pure-JAX reference matching PyTorch LinearAttentionBlock.forward.
    N, C, W, H = l.shape
    wv = w.reshape(C)
    c = jnp.einsum('nchw,c->nhw', l + g, wv)[:, None]        # (N, 1, W, H)
    if normalize_attn:
        a = jax.nn.softmax(c.reshape(N, 1, -1), axis=2).reshape(N, 1, W, H)
        g_out = jnp.sum((a * l).reshape(N, C, -1), axis=2)
    else:
        a = jax.nn.sigmoid(c)
        g_out = jnp.mean((a * l).reshape(N, C, -1), axis=2)
    return c, g_out


if __name__ == "__main__":
    key = jax.random.PRNGKey(0)
    ok = True

    # Shape 1: HW multiple of 128 (exact tiles).  Shape 2: HW=169 (masked tail tile).
    for (N, C, W, H) in ((2, 16, 16, 16), (2, 16, 13, 13)):
        key, k_l, k_g, k_w = jax.random.split(key, 4)
        l = jax.random.normal(k_l, (N, C, W, H), dtype=jnp.float32)
        g = jax.random.normal(k_g, (N, C, W, H), dtype=jnp.float32)
        w = jax.random.normal(k_w, (1, C, 1, 1), dtype=jnp.float32) * 0.1

        for normalize_attn in (True, False):
            c_out, g_out = linear_attention_block(l, g, w, normalize_attn=normalize_attn)
            c_out = jax.block_until_ready(c_out)
            g_out = jax.block_until_ready(g_out)

            c_ref, g_ref = _reference(l, g, w, normalize_attn=normalize_attn)
            assert c_out.shape == (N, 1, W, H)
            assert g_out.shape == (N, C)
            ok &= bool(jnp.allclose(c_out, c_ref, atol=1e-4, rtol=1e-4))
            ok &= bool(jnp.allclose(g_out, g_ref, atol=1e-4, rtol=1e-4))

    assert ok, "mismatch vs reference"
    print("KERNEL_OK")
</pallas_src>

<mosaic_0001>
module attributes {stable_mosaic.version = 11 : i64} {
  func.func @_attn_kernel(%arg0: i32, %arg1: i32, %arg2: memref<1x16x256xf32, #tpu.memory_space<vmem>>, %arg3: memref<1x16x256xf32, #tpu.memory_space<vmem>>, %arg4: memref<1x16xf32, #tpu.memory_space<vmem>>, %arg5: memref<1x1x256xf32, #tpu.memory_space<vmem>>, %arg6: memref<1x16x1xf32, #tpu.memory_space<vmem>>, %arg7: memref<1x1xf32, #tpu.memory_space<vmem>>, %arg8: memref<1x1xf32, #tpu.memory_space<vmem>>, %arg9: memref<16x1xf32, #tpu.memory_space<vmem>>) attributes {dimension_semantics = [#tpu.dimension_semantics<parallel>, #tpu.dimension_semantics<arbitrary>], iteration_bounds = array<i64: 2, 1>, scalar_prefetch = 0 : i64, scratch_operands = 3 : i64, tpu.core_type = #tpu.core_type<tc>, window_params = [{transform_indices = @transform_0, window_bounds = array<i64: 1, 16, 256>}, {transform_indices = @transform_1, window_bounds = array<i64: 1, 16, 256>}, {pipeline_mode = #tpu.pipeline_mode<synchronous>, transform_indices = @transform_2, window_bounds = array<i64: 1, 16>}, {transform_indices = @transform_3, window_bounds = array<i64: 1, 1, 256>}, {transform_indices = @transform_4, window_bounds = array<i64: 1, 16, 1>}]} {
    %c0_i32 = arith.constant 0 : i32
    %0 = arith.cmpi eq, %arg1, %c0_i32 : i32
    %1 = arith.extui %0 : i1 to i32
    %c0_i32_0 = arith.constant 0 : i32
    %2 = arith.cmpi ne, %1, %c0_i32_0 : i32
    scf.if %2 {
      %cst_28 = arith.constant 0xFF800000 : f32
      %39 = vector.broadcast %cst_28 : f32 to vector<1x1xf32>
      %c0_29 = arith.constant 0 : index
      %c0_30 = arith.constant 0 : index
      %40 = vector.load %arg7[%c0_29, %c0_30] : memref<1x1xf32, #tpu.memory_space<vmem>>, vector<1x1xf32>
      tpu.vector_store %arg7[%c0_29, %c0_30], %39 {strides = array<i32>} : memref<1x1xf32, #tpu.memory_space<vmem>>, vector<1x1xf32>,
      %cst_31 = arith.constant 0.000000e+00 : f32
      %41 = vector.broadcast %cst_31 : f32 to vector<1x1xf32>
      %c0_32 = arith.constant 0 : index
      %c0_33 = arith.constant 0 : index
      %42 = vector.load %arg8[%c0_32, %c0_33] : memref<1x1xf32, #tpu.memory_space<vmem>>, vector<1x1xf32>
      tpu.vector_store %arg8[%c0_32, %c0_33], %41 {strides = array<i32>} : memref<1x1xf32, #tpu.memory_space<vmem>>, vector<1x1xf32>,
      %cst_34 = arith.constant 0.000000e+00 : f32
      %43 = vector.broadcast %cst_34 : f32 to vector<16x1xf32>
      %c0_35 = arith.constant 0 : index
      %c0_36 = arith.constant 0 : index
      %44 = vector.load %arg9[%c0_35, %c0_36] : memref<16x1xf32, #tpu.memory_space<vmem>>, vector<16x1xf32>
      tpu.vector_store %arg9[%c0_35, %c0_36], %43 {strides = array<i32>} : memref<16x1xf32, #tpu.memory_space<vmem>>, vector<16x1xf32>,
    } else {
    }
    %c0 = arith.constant 0 : index
    %c0_1 = arith.constant 0 : index
    %c0_2 = arith.constant 0 : index
    %3 = vector.load %arg2[%c0, %c0_1, %c0_2] : memref<1x16x256xf32, #tpu.memory_space<vmem>>, vector<1x16x256xf32>
    %4 = vector.shape_cast %3 : vector<1x16x256xf32> to vector<16x256xf32>
    %c0_3 = arith.constant 0 : index
    %c0_4 = arith.constant 0 : index
    %c0_5 = arith.constant 0 : index
    %5 = vector.load %arg3[%c0_3, %c0_4, %c0_5] : memref<1x16x256xf32, #tpu.memory_space<vmem>>, vector<1x16x256xf32>
    %6 = vector.shape_cast %5 : vector<1x16x256xf32> to vector<16x256xf32>
    %7 = arith.addf %4, %6 : vector<16x256xf32>
    %c0_6 = arith.constant 0 : index
    %c0_7 = arith.constant 0 : index
    %8 = vector.load %arg4[%c0_6, %c0_7] : memref<1x16xf32, #tpu.memory_space<vmem>>, vector<1x16xf32>
    %cst = arith.constant dense<0.000000e+00> : vector<1x256xf32>
    %9 = tpu.matmul %8, %7, %cst {dimension_numbers = #tpu.dot_dimension_numbers<[1], [0], [0], [1], [0, 0, 1, 1], [], []>} : vector<1x16xf32>, vector<16x256xf32>, vector<1x256xf32> -> vector<1x256xf32>
    %c0_8 = arith.constant 0 : index
    %c0_9 = arith.constant 0 : index
    %c0_10 = arith.constant 0 : index
    %10 = vector.load %arg5[%c0_8, %c0_9, %c0_10] : memref<1x1x256xf32, #tpu.memory_space<vmem>>, vector<1x1x256xf32>
    %11 = vector.shape_cast %10 : vector<1x1x256xf32> to vector<1x256xf32>
    %12 = vector.shape_cast %9 : vector<1x256xf32> to vector<1x1x256xf32>
    tpu.vector_store %arg5[%c0_8, %c0_9, %c0_10], %12 {strides = array<i32>} : memref<1x1x256xf32, #tpu.memory_space<vmem>>, vector<1x1x256xf32>,
    %c0_11 = arith.constant 0 : index
    %c0_12 = arith.constant 0 : index
    %13 = vector.load %arg7[%c0_11, %c0_12] : memref<1x1xf32, #tpu.memory_space<vmem>>, vector<1x1xf32>
    %cst_13 = arith.constant dense<0xFF800000> : vector<1xf32>
    %14 = vector.multi_reduction <maximumf>, %9, %cst_13 [1] : vector<1x256xf32> to vector<1xf32>
    %15 = vector.shape_cast %14 : vector<1xf32> to vector<1x1xf32>
    %16 = arith.maximumf %13, %15 : vector<1x1xf32>
    %17 = arith.subf %13, %16 : vector<1x1xf32>
    %18 = math.exp %17 : vector<1x1xf32>
    %19 = vector.broadcast %16 : vector<1x1xf32> to vector<1x256xf32>
    %20 = arith.subf %9, %19 : vector<1x256xf32>
    %21 = math.exp %20 : vector<1x256xf32>
    %c0_14 = arith.constant 0 : index
    %c0_15 = arith.constant 0 : index
    %22 = vector.load %arg8[%c0_14, %c0_15] : memref<1x1xf32, #tpu.memory_space<vmem>>, vector<1x1xf32>
    %23 = arith.mulf %22, %18 : vector<1x1xf32>
    %cst_16 = arith.constant dense<0.000000e+00> : vector<1xf32>
    %24 = vector.multi_reduction <add>, %21, %cst_16 [1] : vector<1x256xf32> to vector<1xf32>
    %25 = vector.shape_cast %24 : vector<1xf32> to vector<1x1xf32>
    %26 = arith.addf %23, %25 : vector<1x1xf32>
    %c0_17 = arith.constant 0 : index
    %c0_18 = arith.constant 0 : index
    %27 = vector.load %arg8[%c0_17, %c0_18] : memref<1x1xf32, #tpu.memory_space<vmem>>, vector<1x1xf32>
    tpu.vector_store %arg8[%c0_17, %c0_18], %26 {strides = array<i32>} : memref<1x1xf32, #tpu.memory_space<vmem>>, vector<1x1xf32>,
    %c0_19 = arith.constant 0 : index
    %c0_20 = arith.constant 0 : index
    %28 = vector.load %arg9[%c0_19, %c0_20] : memref<16x1xf32, #tpu.memory_space<vmem>>, vector<16x1xf32>
    %29 = vector.broadcast %18 : vector<1x1xf32> to vector<16x1xf32>
    %30 = arith.mulf %28, %29 : vector<16x1xf32>
    %31 = tpu.transpose %21, [1, 0] : vector<1x256xf32> -> vector<256x1xf32>
    %cst_21 = arith.constant dense<0.000000e+00> : vector<16x1xf32>
    %32 = tpu.matmul %4, %31, %cst_21 {dimension_numbers = #tpu.dot_dimension_numbers<[1], [0], [0], [1], [0, 0, 1, 1], [], []>} : vector<16x256xf32>, vector<256x1xf32>, vector<16x1xf32> -> vector<16x1xf32>
    %33 = arith.addf %30, %32 : vector<16x1xf32>
    %c0_22 = arith.constant 0 : index
    %c0_23 = arith.constant 0 : index
    %34 = vector.load %arg9[%c0_22, %c0_23] : memref<16x1xf32, #tpu.memory_space<vmem>>, vector<16x1xf32>
    tpu.vector_store %arg9[%c0_22, %c0_23], %33 {strides = array<i32>} : memref<16x1xf32, #tpu.memory_space<vmem>>, vector<16x1xf32>,
    %c0_24 = arith.constant 0 : index
    %c0_25 = arith.constant 0 : index
    %35 = vector.load %arg7[%c0_24, %c0_25] : memref<1x1xf32, #tpu.memory_space<vmem>>, vector<1x1xf32>
    tpu.vector_store %arg7[%c0_24, %c0_25], %16 {strides = array<i32>} : memref<1x1xf32, #tpu.memory_space<vmem>>, vector<1x1xf32>,
    %c0_i32_26 = arith.constant 0 : i32
    %36 = arith.cmpi eq, %arg1, %c0_i32_26 : i32
    %37 = arith.extui %36 : i1 to i32
    %c0_i32_27 = arith.constant 0 : i32
    %38 = arith.cmpi ne, %37, %c0_i32_27 : i32
    scf.if %38 {
      %c0_28 = arith.constant 0 : index
      %c0_29 = arith.constant 0 : index
      %39 = vector.load %arg9[%c0_28, %c0_29] : memref<16x1xf32, #tpu.memory_space<vmem>>, vector<16x1xf32>
      %c0_30 = arith.constant 0 : index
      %c0_31 = arith.constant 0 : index
      %40 = vector.load %arg8[%c0_30, %c0_31] : memref<1x1xf32, #tpu.memory_space<vmem>>, vector<1x1xf32>
      %41 = vector.broadcast %40 : vector<1x1xf32> to vector<16x1xf32>
      %42 = arith.divf %39, %41 : vector<16x1xf32>
      %c0_32 = arith.constant 0 : index
      %c0_33 = arith.constant 0 : index
      %c0_34 = arith.constant 0 : index
      %43 = vector.load %arg6[%c0_32, %c0_33, %c0_34] : memref<1x16x1xf32, #tpu.memory_space<vmem>>, vector<1x16x1xf32>
      %44 = vector.shape_cast %43 : vector<1x16x1xf32> to vector<16x1xf32>
      %45 = vector.shape_cast %42 : vector<16x1xf32> to vector<1x16x1xf32>
      tpu.vector_store %arg6[%c0_32, %c0_33, %c0_34], %45 {strides = array<i32>} : memref<1x16x1xf32, #tpu.memory_space<vmem>>, vector<1x16x1xf32>,
    } else {
    }
    return
  }
  func.func @transform_0(%arg0: i32, %arg1: i32) -> (i32, i32, i32) {
    %c0_i32 = arith.constant 0 : i32
    %c0_i32_0 = arith.constant 0 : i32
    return %arg0, %c0_i32, %arg1 : i32, i32, i32
  }
  func.func @transform_1(%arg0: i32, %arg1: i32) -> (i32, i32, i32) {
    %c0_i32 = arith.constant 0 : i32
    %c0_i32_0 = arith.constant 0 : i32
    return %arg0, %c0_i32, %arg1 : i32, i32, i32
  }
  func.func @transform_2(%arg0: i32, %arg1: i32) -> (i32, i32) {
    %c0_i32 = arith.constant 0 : i32
    %c0_i32_0 = arith.constant 0 : i32
    %c0_i32_1 = arith.constant 0 : i32
    return %c0_i32, %c0_i32_0 : i32, i32
  }
  func.func @transform_3(%arg0: i32, %arg1: i32) -> (i32, i32, i32) {
    %c0_i32 = arith.constant 0 : i32
    %c0_i32_0 = arith.constant 0 : i32
    return %arg0, %c0_i32, %arg1 : i32, i32, i32
  }
  func.func @transform_4(%arg0: i32, %arg1: i32) -> (i32, i32, i32) {
    %c0_i32 = arith.constant 0 : i32
    %c0_i32_0 = arith.constant 0 : i32
    %c0_i32_1 = arith.constant 0 : i32
    return %arg0, %c0_i32, %c0_i32_0 : i32, i32, i32
  }
}

</mosaic_0001>

<bundles_post_ra>
// kernel: tpu_custom_call.1
= control target key start
LH: loop header
LB: loop body
LE: loop exit
PB: predicated region body
PF: predicated region fallthrough
CT: control target
= control target key end

     0   :  { %s1416_s0 = inlined_call_operand.hbm [shape: f32[2,16,256], index: 0, kind: input, shape index: {}]   ;;  %s1417_s1 = inlined_call_operand.hbm [shape: f32[2,16,256], index: 1, kind: input, shape index: {}]   ;;  %s1418_s2 = inlined_call_operand.hbm [shape: f32[1,16], index: 2, kind: input, shape index: {}]   ;;  %s1419_s3 = inlined_call_operand.hbm [shape: f32[2,1,256], index: 3, kind: output, shape index: {0}]   ;;  %s1420_s4 = inlined_call_operand.hbm [shape: f32[2,16,1], index: 4, kind: output, shape index: {1}]  }
   0x1   :  { %1427 = sst [smem:[#allocation20_spill]] %s1416_s0 }
   0x2   :  { %1428 = sst [smem:[#allocation21_spill]] %s1418_s2 }
   0x3   :  { %10 = vsyncpa [#allocation6], 0 }
   0x4   :  { %12 = vsyncpa [#allocation6 + $0x1], 0 }
   0x5   :  { %13 = vsyncpa [#allocation9], 0 }
   0x6   :  { %15 = vsyncpa [#allocation9 + $0x1], 0 }
   0x7   :  { %16 = vsyncpa [#allocation7], 0 }
   0x8   :  { %18 = vsyncpa [#allocation7 + $0x1], 0 }
   0x9   :  { %19 = vsyncpa [#allocation13], 0 }
   0xa   :  { %21 = vsyncpa [#allocation13 + $0x1], 0  ;;  %s1086_s15 = smov 0   ;;  %s1088_s16 = smov 0  }
   0xb   :  { %s1090_s17 = smov 0   ;;  %s1092_s18 = smov 0  }
   0xc   :  { %s1094_s19 = smov 0   ;;  %s1096_s20 = smov 0  }
   0xd LB: > { %s1117_s21 = sadd.s32 4294967295, %s1046_s20   ;;  %s702_s22 = sadd.s32 4294967294, %s1046_s20   ;;  %s1046_s20 = sphi %s1096_s20, %s27_s20   ;;  %s1042_s19 = sphi %s1094_s19, %s1454_s19   ;;  %s1038_s18 = sphi %s1092_s18, %s1453_s18   ;;  %s1034_s17 = sphi %s1090_s17, %s1452_s17   ;;  %s1030_s16 = sphi %s1088_s16, %s1451_s16   ;;  %s1026_s15 = sphi %s1086_s15, %s1450_s15  }
   0xe   : > { %s48_s23 = sadd.s32 1, %s1034_s17  ;;  %p55_p0 = scmp.ne.s32.totalorder %s1034_s17, %s1030_s16 }
   0xf   : > { %p56_p1 = scmp.eq.s32.totalorder %s1046_s20, 0  ;;  %p61_p2 = scmp.ne.s32.totalorder %s1030_s16, %s1026_s15 }
  0x10   : > { %p1421_p3 = scmp.eq.s32.totalorder %s1117_s21, 0  ;;  %p136_p4 = scmp.eq.s32.totalorder %s1117_s21, 1 }
  0x11   : > { %p1128_p5 = por %p56_p1, %p55_p0  ;;  %p142_p6 = scmp.eq.s32.totalorder %s702_s22, 1 }
  0x12   : > { %p1134_p7 = por %p1421_p3, %p61_p2  ;;  %p1138_p8 = por %p136_p4, %p55_p0 }
  0x13   : > { %p1142_p9 = por %p142_p6, %p61_p2  ;;  %p703_p10 = scmp.ge.s32.totalorder %s1046_s20, 1 }
  0x14   : > { %s1430_s25 = scalar_select %p1134_p7, 1, 0 }
  0x15   : > { %s1431_s26 = scalar_select %p1138_p8, 1, 0 }
  0x16   : > { %s1432_s27 = scalar_select %p1142_p9, 1, 0 }
  0x17   : > { %p175_p11 = scmp.lt.s32.totalorder %s1046_s20, 3  ;;  %s1048_s29 = smov [#allocation10]  }
  0x18   : > { %s188_s30 = sshll.u32 %s1048_s29, 4  ;;  %p767_p1 = scmp.lt.s32.totalorder %s1046_s20, 2  ;;  %s189_s30 = int_to_ptr.vmem [resolvable:$true] %s188_s30 }
  0x19   : > { %p1149_p13 = pnand %p703_p10, %p175_p11  ;;  %s39_s7 = sadd.s32 1, %s1042_s19 }
  0x1a   : > { %p1158_p4 = pnand %p767_p1, %p1128_p5  ;;  %p1169_p6 = scmp.ge.s32.totalorder %s39_s7, 2 }
  0x1b   : > { %s1433_s28 = scalar_select %p1149_p13, 1, 0 }
  0x1c   : > { %p748_p0 = pneg %p1149_p13  ;;  %s199_s9 = sand.u32 1, %s1034_s17  }
  0x1d   : > { %s1434_s5 = scalar_select %p1158_p4, 1, 0 }
  0x1e   : > { %p1164_p2 = pnand %p748_p0, %p1421_p3  ;;  %s1437_s2 = sld [smem:[#allocation21_spill]] }
  0x1f   : > { %s1436_s8 = scalar_select %p1169_p6, 1, 0 }
  0x20   : > { %p838_p10 = pneg %p1164_p2 }
  0x24   : > { %s836_s12 = scalar_lea.hbm %s1437_s2, 16 }
  0x25   : > { %p837_p5 = scmp.ne.s32.totalorder %s1437_s2, %s836_s12  ;;  %p843_p0 = scmp.lt.u32.totalorder %s836_s12, %s1437_s2 }
  0x27   : > { %p839_p11 = pnand %p838_p10, %p837_p5 }
  0x29   : > { %p840_p1 = pneg %p839_p11 }
  0x2b   : > { %p845_p12 = pnand %p843_p0, %p840_p1 }
  0x2d   : > { %848 = shalt.err (!%p845_p12)
}
  0x2e   : > { %s849_s29 = scalar_lea.vmem %s189_s30, 16  ;;  %s856_s10 = scalar_lea.vmem %s189_s30, 32 }
  0x2f   : > { %p850_p3 = scmp.ne.s32.totalorder %s189_s30, %s849_s29  ;;  %p857_p7 = scmp.lt.s32.totalorder %s189_s30, %s189_s30 }
  0x30   : > { %p858_p13 = scmp.lt.s32.totalorder %s856_s10, %s849_s29 }
  0x31   : > { %p852_p9 = pnand %p850_p3, %p838_p10 }
  0x32   : > { %p859_p4 = por %p858_p13, %p857_p7 }
  0x33   : > { %p853_p8 = pneg %p852_p9 }
  0x35   : > { %p860_p6 = pnand %p859_p4, %p853_p8 }
  0x37   : > { %863 = shalt.err (!%p860_p6)
}
  0x38   : > { %751 = dma.hbm_to_vmem [thread:$0]  (!%p1164_p2), %s1437_s2, 16, %s189_s30, [#allocation9]  }
  0x39   : > { %p1438_p3 = scmp.ne.s32.totalorder %s1436_s8, 0  ;;  %s1196_s6 = sshll.u32 %s199_s9, 5 }
  0x3a   : > { %s728_s14 = sshll.u32 %s1042_s19, 9  ;;  %s1440_s0 = sld [smem:[#allocation20_spill]] }
  0x3b   : > { %s1456_s7 = smov (%p1438_p3, %s39_s7), 0  ;;  %s203_s30 = scalar_lea.vmem [#allocation5], %s1196_s6 }
  0x3c   : > { %1439 = sst [smem:[#allocation19_spill]] %s1456_s7  ;;  %s43_s12 = ssub.s32 %s1042_s19, %s1456_s7 }
  0x3d   : > { %p46_p7 = scmp.eq.s32.totalorder %s43_s12, 0  ;;  %s212_s8 = sshll.u32 %s203_s30, 4  ;;  %s1214_s8 = int_to_ptr.vmem [resolvable:$true] %s212_s8 }
  0x3e   : > { %s1218_s11 = scalar_lea.sflag [#allocation6], %s199_s9  ;;  %p1441_p9 = scmp.ne.s32.totalorder %s1434_s5, 0 }
  0x3f   : > { %s1212_s10 = scalar_select %p46_p7, %s1034_s17, %s48_s23  }
  0x40   : > { %s1206_s29 = scalar_lea.hbm %s1440_s0, %s728_s14  ;;  %p866_p12 = pneg %p1441_p9 }
  0x41   : > { %s864_s13 = scalar_lea.hbm %s1206_s29, 512  ;;  %s869_s24 = scalar_lea.hbm %s1440_s0, 1024 }
  0x42   : > { %p865_p8 = scmp.ne.s32.totalorder %s1206_s29, %s864_s13  ;;  %p870_p2 = scmp.lt.u32.totalorder %s1206_s29, %s1440_s0 }
  0x43   : > { %p871_p6 = scmp.lt.u32.totalorder %s869_s24, %s864_s13  ;;  %p873_p10 = scmp.lt.u32.totalorder %s864_s13, %s1206_s29 }
  0x44   : > { %p867_p13 = pnand %p866_p12, %p865_p8 }
  0x45   : > { %p872_p5 = por %p871_p6, %p870_p2 }
  0x46   : > { %p868_p4 = pneg %p867_p13 }
  0x47   : > { %p874_p11 = por %p873_p10, %p872_p5 }
  0x49   : > { %p875_p1 = pnand %p874_p11, %p868_p4 }
  0x4b   : > { %878 = shalt.err (!%p875_p1)
}
  0x4c   : > { %s879_s9 = scalar_lea.vmem %s1214_s8, 512  ;;  %s1049_s12 = smov [#allocation5]  }
  0x4d   : > { %p880_p0 = scmp.ne.s32.totalorder %s1214_s8, %s879_s9  ;;  %s884_s22 = sshll.u32 %s1049_s12, 4  ;;  %s885_s22 = int_to_ptr.vmem [resolvable:$false] %s884_s22 }
  0x4e   : > { %s886_s30 = scalar_lea.vmem %s885_s22, 1024  ;;  %p887_p8 = scmp.lt.s32.totalorder %s1214_s8, %s885_s22 }
  0x4f   : > { %p882_p3 = pnand %p880_p0, %p866_p12  ;;  %p888_p13 = scmp.lt.s32.totalorder %s886_s30, %s879_s9 }
  0x51   : > { %p883_p7 = pneg %p882_p3  ;;  %p889_p2 = por %p888_p13, %p887_p8 }
  0x53   : > { %p890_p6 = pnand %p889_p2, %p883_p7 }
  0x55   : > { %893 = shalt.err (!%p890_p6)
}
  0x56   : > { %s1050_s13 = smov 256   ;;  %s1051_s24 = smov 16  }
  0x57   : > { %755 = dma.hbm_to_vmem [thread:$0]  (!%p1441_p9), %s1206_s29, 512, %s1214_s8, %s1218_s11, %s1050_s13, %s1050_s13, %s1051_s24  }
  0x58   : > { %s1254_s12 = scalar_lea.hbm %s1417_s1, %s728_s14  ;;  %s226_s22 = scalar_lea.vmem [#allocation8], %s1196_s6 }
  0x59   : > { %s235_s30 = sshll.u32 %s226_s22, 4  ;;  %s222_s0 = sand.u32 1, %s1046_s20   ;;  %s1257_s30 = int_to_ptr.vmem [resolvable:$true] %s235_s30 }
  0x5a   : > { %s1260_s2 = scalar_lea.sflag [#allocation9], %s222_s0  ;;  %s894_s7 = scalar_lea.hbm %s1254_s12, 512 }
  0x5b   : > { %p895_p4 = scmp.ne.s32.totalorder %s1254_s12, %s894_s7  ;;  %s899_s8 = scalar_lea.hbm %s1417_s1, 1024 }
  0x5c   : > { %p900_p11 = scmp.lt.u32.totalorder %s1254_s12, %s1417_s1  ;;  %p901_p1 = scmp.lt.u32.totalorder %s899_s8, %s894_s7 }
  0x5d   : > { %p897_p5 = pnand %p895_p4, %p866_p12  ;;  %p903_p3 = scmp.lt.u32.totalorder %s894_s7, %s1254_s12 }
  0x5e   : > { %p902_p0 = por %p901_p1, %p900_p11 }
  0x5f   : > { %p898_p10 = pneg %p897_p5 }
  0x60   : > { %p904_p7 = por %p903_p3, %p902_p0 }
  0x62   : > { %p905_p8 = pnand %p904_p7, %p898_p10 }
  0x64   : > { %908 = shalt.err (!%p905_p8)
}
  0x65   : > { %s909_s0 = scalar_lea.vmem %s1257_s30, 512  ;;  %s1052_s6 = smov [#allocation8]  }
  0x66   : > { %p910_p13 = scmp.ne.s32.totalorder %s1257_s30, %s909_s0  ;;  %s914_s9 = sshll.u32 %s1052_s6, 4  ;;  %s915_s9 = int_to_ptr.vmem [resolvable:$false] %s914_s9 }
  0x67   : > { %s916_s22 = scalar_lea.vmem %s915_s9, 1024  ;;  %p917_p4 = scmp.lt.s32.totalorder %s1257_s30, %s915_s9 }
  0x68   : > { %p912_p2 = pnand %p910_p13, %p866_p12  ;;  %p918_p5 = scmp.lt.s32.totalorder %s916_s22, %s909_s0 }
  0x6a   : > { %p913_p6 = pneg %p912_p2  ;;  %p919_p11 = por %p918_p5, %p917_p4 }
  0x6c   : > { %p920_p1 = pnand %p919_p11, %p913_p6 }
  0x6e   : > { %923 = shalt.err (!%p920_p1)
}
  0x6f   : > { %758 = dma.hbm_to_vmem [thread:$0]  (!%p1441_p9), %s1254_s12, 512, %s1257_s30, %s1260_s2, %s1050_s13, %s1050_s13, %s1051_s24  }
  0x70   : > { %p1442_p12 = scmp.ne.s32.totalorder %s1433_s28, 0 }
  0x71   : > { %s1292_s7 = sand.u32 (!%p1442_p12), 1, %s1030_s16   ;;  %p1443_p10 = scmp.ne.s32.totalorder (!%p1442_p12), %s1430_s25, 0 }
  0x72   : > { %247 = sbr.rel (%p1442_p12) target bundleno = 828 (0x33c), region = 32  ;;  %s713_s29 = sshll.u32 (!%p1442_p12), %s1292_s7, 5 }
  0x73   : > { %s250_s14 = scalar_lea.sflag (!%p1442_p12), [#allocation6], %s1292_s7  ;;  %s253_s8 = scalar_lea.vmem (!%p1442_p12), [#allocation5], %s713_s29 }
  0x79   : > { %1005 = dma.done.wait (%p1443_p10), %s250_s14, 512  }
  0x7a   : > { %1007 = vsyncadd (%p1443_p10), %s250_s14, 4294966784  ;;  %s258_s2 = sand.u32 1, %s1117_s21   ;;  %s262_s28 = scalar_lea.vmem [#allocation8], %s713_s29 }
  0x7b   : > { %s259_s5 = scalar_lea.sflag [#allocation9], %s258_s2 }
  0x7c   : > { %1009 = dma.done.wait (%p1443_p10), %s259_s5, 512  }
  0x7d   : > { %1011 = vsyncadd (%p1443_p10), %s259_s5, 4294966784  ;;  %p1444_p9 = scmp.eq.s32.totalorder %s1117_s21, 0 }
  0x7f   : > { %1013 = dma.done.wait (%p1444_p9), [#allocation9], 16   ;;  %p1445_p0 = pmov %p1444_p9 }
  0x80   : > { %vm308_vm0 = vcmask 0   ;;  %vm311_vm1 = vcmask 7168   ;;  %v1053_v0 = vmov 0.0   ;;  %v1312_v1 = vld [vmem:[%s253_s8 + $0x8] sm:$0xff]  ;;  %v1314_v2 = vld [vmem:[%s253_s8 + $0x18] sm:$0xff]  ;;  %v314_v6 = vld [vmem:[%s253_s8] sm:$0xff]  ;;  %v408_v19 = vlaneseq }
  0x81   : > { %1015 = vsyncadd (%p1445_p0), [#allocation9], 4294967280  ;;  %310 = vst.msk [vmem:[#allocation3] sm:$0x1] %vm308_vm0, %v1053_v0  ;;  %395 = vmatprep.mubr.f32.mxu0 %v1053_v0  ;;  %v319_v3 = vld [vmem:[%s262_s28 + $0x8] sm:$0xff]  ;;  %v321_v4 = vld [vmem:[%s262_s28 + $0x18] sm:$0xff] }
  0x82   : > { %312 = vst.msk [vmem:[#allocation4] sm:$0xff] %vm311_vm1, %v1053_v0  ;;  %313 = vst.msk [vmem:[#allocation4 + $0x8] sm:$0xff] %vm311_vm1, %v1053_v0  ;;  %v323_v5 = vadd.f32 %v319_v3, %v1312_v1  ;;  %v316_v7 = vld [vmem:[%s253_s8 + $0x10] sm:$0xff]  ;;  %v325_v8 = vadd.f32 %v321_v4, %v1314_v2  ;;  %v318_v9 = vld [vmem:[%s262_s28] sm:$0xff]  ;;  %vm327_vm2 = vcmask 130048   ;;  %v1054_v16 = vmov -inf  }
  0x83   : > { %v320_v10 = vld [vmem:[%s262_s28 + $0x10] sm:$0xff]  ;;  %v322_v11 = vadd.f32 %v318_v9, %v314_v6  ;;  %v326_v15 = vld [vmem:[#allocation10] sm:$0x1]  ;;  %309 = vst.msk [vmem:[#allocation2] sm:$0x1] %vm308_vm0, %v1054_v16  ;;  %v409_v21 = vshrl.u32 %v408_v19, 7 }
  0x84   : > { %v324_v12 = vadd.f32 %v320_v10, %v316_v7  ;;  %v732_v13 = vpack.c.bf16 %v325_v8, %v323_v5  ;;  %v1055_v17 = vmov 1966171168   ;;  %vm426_vm3 = vcmask 1040384   ;;  %s716_s21 = sshll.u32 %s1292_s7, 1  ;;  %s730_s13 = sshll.u32 %s1038_s18, 5 }
  0x85   : > { %v406_v18 = vunpack.c.l.s4 %v1055_v17  ;;  %vm422_vm4 = vcmp.lt.s32.totalorder %v408_v19, 256  ;;  %s1322_s25 = scalar_lea.vmem [#allocation11], %s716_s21  ;;  %v1056_v31 = vmov 0   ;;  %v443_v36 = vsub.s32 0, %v409_v21  ;;  %s1334_s30 = scalar_lea.hbm %s1419_s3, %s730_s13 }
  0x86   : > { %v734_v14 = vpack.c.bf16 %v324_v12, %v322_v11  ;;  %733 = vmatprep.subr.bf16.mxu0 %v732_v13  ;;  %827 = vset.pattern.permute.xlu0 %v1056_v31  ;;  %s534_s11 = sshll.u32 %s1322_s25, 4  ;;  %s513_s23 = scalar_lea.sflag [#allocation7], %s1292_s7  ;;  %s535_s11 = int_to_ptr.vmem [resolvable:$true] %s534_s11 }
  0x87   : > { %v407_v20 = vunpack.c.0.s8 %v406_v18  ;;  %s924_s0 = scalar_lea.vmem %s535_s11, 32  ;;  %p1446_p7 = scmp.ne.s32.totalorder %s1431_s26, 0 }
  0x88   : > { %735 = vmatpush1.bf16.msra.mxu0 %v734_v14  ;;  %p925_p3 = scmp.ne.s32.totalorder %s535_s11, %s924_s0  ;;  %s1057_s6 = smov [#allocation11]  }
  0x89   : > { %v410_v23 = vsub.s32 %v407_v20, %v409_v21  ;;  %s928_s9 = sshll.u32 %s1057_s6, 4  ;;  %s929_s9 = int_to_ptr.vmem [resolvable:$false] %s928_s9 }
  0x8a   : > { %v425_v32 = vld [vmem:[#allocation2] sm:$0x1]  ;;  %p926_p8 = pnand %p925_p3, %p1446_p7  ;;  %s930_s22 = scalar_lea.vmem %s929_s9, 64 }
  0x8b   : > { %718 = vmatmul.mubr.msk.f32.vlgmr.msra.gmra.mrb[0].mxu0 %vm327_vm2, %v326_v15  ;;  %p931_p2 = scmp.lt.s32.totalorder %s535_s11, %s929_s9  ;;  %p932_p6 = scmp.lt.s32.totalorder %s930_s22, %s924_s0 }
  0x8c   : > { %p927_p13 = pneg %p926_p8 }
  0x8d   : > { %p933_p4 = por %p932_p6, %p931_p2 }
  0x8f   : > { %p934_p5 = pnand %p933_p4, %p927_p13 }
 0x15e   : > { %v397_v22 = vpop.f32.mrb[0].mxu0 }
 0x15f   : > { %v399_v24 = vpop.f32.mrb[1].mxu0  ;;  %v427_v25 = vsel %vm426_vm3, %v397_v22, -inf }
 0x160   : > { %v404_v26 = vcombine.low %v397_v22, %v399_v24  ;;  %v428_v27 = vsel %vm426_vm3, %v399_v24, -inf }
 0x161   : > { %v429_v28 = vmax.f32 %v427_v25, %v428_v27 }
 0x162   : > { %v411_v29 = vrot.slane %v404_v26, %v410_v23 }
 0x163   : > { %430 = vmax.xlane.f32.xlu0 %v429_v28 }
 0x164   : > { %v418_v30 = vrot.slane %v411_v29, %v410_v23 }
 0x166   : > { %424 = vst.msk [vmem:[%s1322_s25] sm:$0x3] %vm422_vm4, %v418_v30 }
 0x1f0   : > { %v431_v33 = vpop.xlane.xlu0 %430 }
 0x1f1   : > { %v432_v34 = vmax.f32 %v425_v32, %v431_v33 }
 0x1f3   : > { %v433_v35 = vsub.f32 %v425_v32, %v432_v34  ;;  %494 = vst.msk [vmem:[#allocation2] sm:$0x1] %vm308_vm0, %v432_v34  ;;  %438 = vperm.xlu0 %827, %v432_v34  }
 0x272   : > { %v439_v37 = vpop.permute.xlu0 %438 }
 0x273   : > { %v444_v38 = vrot.slane %v439_v37, %v443_v36 }
 0x275   : > { %v445_v39 = vsub.f32 %v397_v22, %v444_v38  ;;  %v446_v40 = vsub.f32 %v399_v24, %v444_v38 }
 0x277   : > { %v447_v41 = vmul.f32 1.442695, %v445_v39  ;;  %v449_v42 = vmul.f32 1.442695, %v446_v40 }
 0x279   : > { %828 = vpow2.f32 %v447_v41 }
 0x27a   : > { %830 = vpow2.f32 %v449_v42 }
 0x283   : > { %v829_v43 = vpop.eup %828 }
 0x284   : > { %v831_v44 = vpop.eup %830  ;;  %v453_v45 = vsel %vm426_vm3, %v829_v43, 0.0  ;;  %v474_v46 = vrot.slane %v829_v43, %v443_v36 }
 0x285   : > { %v454_v47 = vsel %vm426_vm3, %v831_v44, 0.0  ;;  %v478_v48 = vrot.slane %v831_v44, %v443_v36 }
 0x286   : > { %v455_v49 = vadd.f32 %v454_v47, %v453_v45  ;;  %v479_v50 = vmul.f32 %v474_v46, %v314_v6  ;;  %v481_v51 = vmul.f32 %v474_v46, %v316_v7 }
 0x287   : > { %v480_v52 = vmul.f32 %v478_v48, %v1312_v1  ;;  %v482_v53 = vmul.f32 %v478_v48, %v1314_v2 }
 0x288   : > { %456 = vadd.xlane.f32.xlu1 %v455_v49 }
 0x289   : > { %v483_v54 = vadd.f32 %v480_v52, %v479_v50  ;;  %v486_v55 = vadd.f32 %v482_v53, %v481_v51 }
 0x28c   : > { %484 = vadd.xlane.f32.xlu1 %v483_v54 }
 0x290   : > { %487 = vadd.xlane.f32.xlu1 %v486_v55 }
 0x291   : > { %937 = shalt.err (!%p934_p5)
}
 0x292   : > { %s938_s29 = scalar_lea.hbm %s1334_s30, 32  ;;  %s942_s2 = scalar_lea.hbm %s1419_s3, 64 }
 0x293   : > { %p939_p11 = scmp.ne.s32.totalorder %s1334_s30, %s938_s29  ;;  %p943_p10 = scmp.lt.u32.totalorder %s1334_s30, %s1419_s3 }
 0x294   : > { %p944_p9 = scmp.lt.u32.totalorder %s942_s2, %s938_s29  ;;  %p946_p3 = scmp.lt.u32.totalorder %s938_s29, %s1334_s30 }
 0x295   : > { %p940_p1 = pnand %p939_p11, %p1446_p7 }
 0x296   : > { %p945_p0 = por %p944_p9, %p943_p10 }
 0x297   : > { %p941_p12 = pneg %p940_p1 }
 0x298   : > { %p947_p8 = por %p946_p3, %p945_p0 }
 0x29a   : > { %p948_p13 = pnand %p947_p8, %p941_p12 }
 0x29c   : > { %951 = shalt.err (!%p948_p13)
}
 0x29d   : > { %744 = dma.vmem_to_hbm [thread:$0]  (%p1446_p7), %s535_s11, 32, %s1334_s30, %s513_s23   ;;  %v434_v56 = vmul.f32 1.442695, %v433_v35  ;;  %v451_v58 = vld [vmem:[#allocation3] sm:$0x1]  ;;  %v461_v62 = vld [vmem:[#allocation4] sm:$0xff] }
 0x29e   : > { %v462_v2 = vld [vmem:[#allocation4 + $0x8] sm:$0xff]  ;;  %s717_s21 = sshll.u32 %s1292_s7, 4  ;;  %s731_s25 = sshll.u32 %s1038_s18, 8 }
 0x29f   : > { %832 = vpow2.f32 %v434_v56  ;;  %s300_s13 = scalar_lea.vmem [#allocation12], %s717_s21  ;;  %s1363_s11 = scalar_lea.hbm %s1420_s4, %s731_s25 }
 0x2a0   : > { %s547_s24 = sshll.u32 %s300_s13, 4  ;;  %s518_s18 = scalar_lea.sflag [#allocation13], %s1292_s7  ;;  %s1365_s24 = int_to_ptr.vmem [resolvable:$true] %s547_s24 }
 0x2a1   : > { %s952_s23 = scalar_lea.vmem %s1365_s24, 256  ;;  %s1058_s0 = smov [#allocation12]  }
 0x2a2   : > { %p953_p2 = scmp.ne.s32.totalorder %s1365_s24, %s952_s23  ;;  %s956_s6 = sshll.u32 %s1058_s0, 4  ;;  %s957_s6 = int_to_ptr.vmem [resolvable:$false] %s956_s6 }
 0x2a3   : > { %s958_s9 = scalar_lea.vmem %s957_s6, 512  ;;  %p959_p5 = scmp.lt.s32.totalorder %s1365_s24, %s957_s6 }
 0x2a4   : > { %p954_p6 = pnand %p953_p2, %p1446_p7  ;;  %p960_p11 = scmp.lt.s32.totalorder %s958_s9, %s952_s23 }
 0x2a6   : > { %p955_p4 = pneg %p954_p6  ;;  %p961_p1 = por %p960_p11, %p959_p5 }
 0x2a8   : > { %p962_p12 = pnand %p961_p1, %p955_p4 }
 0x2a9   : > { %v833_v57 = vpop.eup %832 }
 0x2aa   : > { %v452_v59 = vmul.f32 %v833_v57, %v451_v58  ;;  %v467_v60 = vrot.slane %v833_v57, %v443_v36 }
 0x2ac   : > { %v469_v0 = vmul.f32 %v467_v60, %v461_v62  ;;  %v470_v4 = vmul.f32 %v467_v60, %v462_v2 }
 0x315   : > { %v457_v61 = vpop.xlane.xlu1 %456 }
 0x316   : > { %v458_v63 = vadd.f32 %v457_v61, %v452_v59 }
 0x318   : > { %460 = vst.msk [vmem:[#allocation3] sm:$0x1] %vm308_vm0, %v458_v63 }
 0x319   : > { %v485_v1 = vpop.xlane.xlu1 %484 }
 0x31a   : > { %v489_v3 = vadd.f32 %v485_v1, %v469_v0 }
 0x31c   : > { %492 = vst.msk [vmem:[#allocation4] sm:$0xff] %vm311_vm1, %v489_v3 }
 0x31d   : > { %v488_v5 = vpop.xlane.xlu1 %487 }
 0x31e   : > { %v490_v6 = vadd.f32 %v488_v5, %v470_v4 }
 0x31f   : > { %v719_v7 = vld [vmem:[#allocation3] ss:$0 sm:$0xff] }
 0x320   : > { %493 = vst.msk [vmem:[#allocation4 + $0x8] sm:$0xff] %vm311_vm1, %v490_v6  ;;  %834 = vrcp.f32 %v719_v7 }
 0x323   : > { %v498_v9 = vld [vmem:[#allocation4] sm:$0xff] }
 0x327   : > { %v499_v10 = vld [vmem:[#allocation4 + $0x8] sm:$0xff] }
 0x32a   : > { %v835_v8 = vpop.eup %834 }
 0x32b   : > { %v508_v11 = vmul.f32 %v835_v8, %v498_v9  ;;  %v509_v12 = vmul.f32 %v835_v8, %v499_v10 }
 0x32d   : > { %510 = vst.msk [vmem:[%s300_s13] sm:$0xff] %vm311_vm1, %v508_v11  ;;  %511 = vst.msk [vmem:[%s300_s13 + $0x8] sm:$0xff] %vm311_vm1, %v509_v12 }
 0x32e   : > { %965 = shalt.err (!%p962_p12)
}
 0x32f   : > { %s966_s22 = scalar_lea.hbm %s1363_s11, 256  ;;  %s970_s8 = scalar_lea.hbm %s1420_s4, 512 }
 0x330   : > { %p967_p10 = scmp.ne.s32.totalorder %s1363_s11, %s966_s22  ;;  %p971_p3 = scmp.lt.u32.totalorder %s1363_s11, %s1420_s4 }
 0x331   : > { %p972_p8 = scmp.lt.u32.totalorder %s970_s8, %s966_s22  ;;  %p974_p2 = scmp.lt.u32.totalorder %s966_s22, %s1363_s11 }
 0x332   : > { %p968_p9 = pnand %p967_p10, %p1446_p7 }
 0x333   : > { %p973_p13 = por %p972_p8, %p971_p3 }
 0x334   : > { %p969_p0 = pneg %p968_p9 }
 0x335   : > { %p975_p6 = por %p974_p2, %p973_p13 }
 0x337   : > { %p976_p4 = pnand %p975_p6, %p969_p0 }
 0x339   : > { %979 = shalt.err (!%p976_p4)
}
 0x33a   : > { %s1059_s28 = smov 128   ;;  %s1060_s21 = smov 8  }
 0x33b   : > { %745 = dma.vmem_to_hbm [thread:$0]  (%p1446_p7), %s1365_s24, 256, %s1363_s11, %s518_s18, %s1059_s28, %s1059_s28, %s1060_s21  }
 0x33c PF: > { %s562_s25 = sand.u32 1, %s1026_s15   ;;  %p1447_p5 = scmp.ne.s32.totalorder %s1432_s27, 0 }
 0x33d   : > { %p1448_p11 = scmp.ge.s32.totalorder %s1046_s20, 2  ;;  %s563_s13 = scalar_lea.sflag [#allocation7], %s562_s25 }
 0x33f   : > { %p760_p1 = pnand %p1448_p11, %p1447_p5 }
 0x341   : > { %1017 = dma.done.wait (!%p760_p1), %s563_s13, 32  }
 0x342   : > { %1019 = vsyncadd (!%p760_p1), %s563_s13, 4294967264  ;;  %s572_s12 = scalar_lea.sflag [#allocation13], %s562_s25 }
 0x343   : > { %1021 = dma.done.wait (!%p760_p1), %s572_s12, 256  }
 0x344   : > { %1023 = vsyncadd (!%p760_p1), %s572_s12, 4294967040  ;;  %s27_s20 = sadd.s32 1, %s1046_s20   ;;  %s1449_s26 = sld [smem:[#allocation19_spill]] }
 0x345   : > { %p24_p12 = scmp.ge.s32.totalorder %s27_s20, 4   ;;  %s1450_s15 = smov %s1030_s16 }
 0x346   : > { %s1451_s16 = smov %s1034_s17  ;;  %s1452_s17 = smov %s1212_s10 }
 0x347   : > { %s1453_s18 = smov %s1042_s19  ;;  %26 = sbr.rel (!%p24_p12) target bundleno = 13 (0xd), region = 119 }
 0x34a   : > { %s1454_s19 = smov %s1449_s26 }
 0x34e   :  { %577 = vsyncpa [#allocation6], 1 }
 0x34f   :  { %579 = vsyncpa [#allocation6 + $0x1], 1 }
 0x350   :  { %580 = vsyncpa [#allocation9], 1 }
 0x351   :  { %582 = vsyncpa [#allocation9 + $0x1], 1 }
 0x352   :  { %583 = vsyncpa [#allocation7], 1 }
 0x353   :  { %585 = vsyncpa [#allocation7 + $0x1], 1 }
 0x354   :  { %586 = vsyncpa [#allocation13], 1 }
 0x355   :  { %588 = vsyncpa [#allocation13 + $0x1], 1 }

</bundles_post_ra>
